<compile_context>
chip_gen: v7x
topology: tpu7x:2x2x1
jax: 0.10.0
libtpu: 0.0.40
codegen_flags: <defaults>
</compile_context>

<pallas_src>
import jax
import jax.numpy as jnp
from jax.experimental import pallas as pl
from jax.experimental.pallas import tpu as pltpu


def _get_freqs(d_model: int, max_seq_len: int) -> jnp.ndarray:
    """Deterministic freqs table, identical to the PyTorch _get_freqs."""
    inv_freq = 1.0 / (10000.0 ** (jnp.arange(0, d_model, 2, dtype=jnp.float32) / d_model))
    position = jnp.arange(0, max_seq_len, dtype=jnp.float32)
    freqs = jnp.einsum("i,j->ij", position, inv_freq)            # (max_seq_len, d_model//2)
    return jnp.concatenate((jnp.cos(freqs), jnp.sin(freqs)), axis=-1)  # (max_seq_len, d_model)


def _rope_kernel(f_ref, x_ref, o_ref, cos_ref, sin_ref):
    # f_ref: (t_s, D) f32 = [cos | sin];  x_ref/o_ref: (b_tile, t_s, D)
    d = f_ref.shape[-1]
    half = d // 2

    # Build lane-dense tables once per seq tile (batch is the inner "arbitrary"
    # grid axis, so program_id(1)==0 marks the first step of each seq tile).
    @pl.when(pl.program_id(1) == 0)
    def _build_tables():
        f = f_ref[...]                                       # [cos | sin]
        f_sw = pltpu.roll(f, shift=half, axis=1)             # [sin | cos]  (XLU slot)
        lane = jax.lax.broadcasted_iota(jnp.int32, f.shape, 1)
        lo = lane < half
        cos_ref[...] = jnp.where(lo, f, f_sw)                # [ cos | cos]
        sin_ref[...] = jnp.where(lo, -f_sw, f)               # [-sin | sin]

    cos = cos_ref[...]
    sin = sin_ref[...]

    b_tile = x_ref.shape[0]
    for bi in range(b_tile):                                  # small static unroll
        xb = x_ref[bi]                                        # (t_s, D)
        xb_sw = pltpu.roll(xb, shift=half, axis=1)            # [imag | real]
        o_ref[bi] = (xb * cos + xb_sw * sin).astype(o_ref.dtype)


def _choose_tiles(batch: int, seq_len: int, d_model: int, itemsize: int,
                  target_bytes: int):
    """Pick (b_tile, t_s) so each x block is ~target_bytes and sublane-aligned."""
    sub = {1: 32, 2: 16}.get(itemsize, 8)          # sublane packing for x dtype
    row_bytes = d_model * itemsize
    budget_rows = max(sub, target_bytes // max(1, row_bytes))

    if seq_len > budget_rows:
        # Tile the sequence; one batch element per block.
        t_s = (budget_rows // sub) * sub
        n = pl.cdiv(seq_len, t_s)
        # Rebalance so the ragged last tile is near-full (keeps stores dense).
        t_s = ((pl.cdiv(seq_len, n) + sub - 1) // sub) * sub
        b_tile = 1
    else:
        # Whole sequence fits one tile; fold batch to amortize per-step overhead.
        t_s = seq_len
        rows = ((seq_len + sub - 1) // sub) * sub
        b_tile = int(max(1, min(batch, budget_rows // rows)))
    return b_tile, int(t_s)


def rotary_positional_embedding(x: jnp.ndarray, freqs: jnp.ndarray, *,
                                seq_tile: int | None = None,
                                batch_tile: int | None = None,
                                target_block_bytes: int = 2 * 1024 * 1024) -> jnp.ndarray:
    """x: (batch, seq_len, d_model); freqs: (max_seq_len, d_model) = cat(cos, sin)."""
    batch, seq_len, d_model = x.shape
    assert d_model % 2 == 0, "d_model must be even for rotary embedding"
    assert freqs.shape[0] >= seq_len, "seq_len exceeds max_seq_len of the freqs table"
    assert freqs.shape[1] == d_model, "freqs table d_model mismatch"

    freqs = freqs.astype(jnp.float32)              # keep angle tables in f32
    itemsize = jnp.dtype(x.dtype).itemsize

    b_tile, t_s = _choose_tiles(batch, seq_len, d_model, itemsize, target_block_bytes)
    if seq_tile is not None:
        t_s = int(seq_tile)
    if batch_tile is not None:
        b_tile = int(batch_tile)
    b_tile = max(1, min(b_tile, batch))

    seq_tiles = pl.cdiv(seq_len, t_s)
    batch_tiles = pl.cdiv(batch, b_tile)

    # Explicit VMEM budget from the actual pipeline footprint:
    #   x + out double-buffered, freqs double-buffered, 2 scratch tables, headroom.
    x_blk = b_tile * t_s * d_model * itemsize
    f_blk = t_s * d_model * 4
    footprint = 2 * (2 * x_blk + f_blk) + 2 * f_blk
    vmem_limit = int(min(max(footprint + (4 << 20), 16 << 20), 64 << 20))

    cost = pl.CostEstimate(
        flops=3 * batch * seq_len * d_model,
        transcendentals=0,
        bytes_accessed=2 * batch * seq_len * d_model * itemsize + seq_len * d_model * 4,
    )

    return pl.pallas_call(
        _rope_kernel,
        out_shape=jax.ShapeDtypeStruct((batch, seq_len, d_model), x.dtype),
        grid=(seq_tiles, batch_tiles),   # batch innermost -> freqs tile & tables reused
        in_specs=[
            pl.BlockSpec((t_s, d_model), lambda s, b: (s, 0)),                 # freqs
            pl.BlockSpec((b_tile, t_s, d_model), lambda s, b: (b, s, 0)),      # x
        ],
        out_specs=pl.BlockSpec((b_tile, t_s, d_model), lambda s, b: (b, s, 0)),
        scratch_shapes=[
            pltpu.VMEM((t_s, d_model), jnp.float32),   # cos_full  [cos | cos]
            pltpu.VMEM((t_s, d_model), jnp.float32),   # sin_signed [-sin | sin]
        ],
        compiler_params=pltpu.CompilerParams(
            # batch axis must be "arbitrary": the per-seq-tile table build runs
            # on its first step and the scratch is reused across the sweep.
            dimension_semantics=("parallel", "arbitrary"),
            vmem_limit_bytes=vmem_limit,
        ),
        cost_estimate=cost,
    )(freqs, x)


def _reference(x: jnp.ndarray, freqs: jnp.ndarray) -> jnp.ndarray:
    """Plain-JAX reference mirroring the PyTorch forward."""
    _, seq_len, d_model = x.shape
    half = d_model // 2
    f = freqs[:seq_len].astype(jnp.float32)[None]
    real, imag = x[..., :half].astype(jnp.float32), x[..., half:].astype(jnp.float32)
    cos, sin = f[..., :half], f[..., half:]
    out = jnp.concatenate((real * cos - imag * sin, real * sin + imag * cos), axis=-1)
    return out.astype(x.dtype)


if __name__ == "__main__":
    d_model = 128       # lane-dense last dim (multiple of 128)
    max_seq_len = 16
    batch = 2
    seq_len = 8

    key = jax.random.PRNGKey(0)
    x = jax.random.normal(key, (batch, seq_len, d_model), dtype=jnp.float32)
    freqs = _get_freqs(d_model, max_seq_len)

    out = jax.block_until_ready(rotary_positional_embedding(x, freqs))
    assert out.shape == (batch, seq_len, d_model)
    assert jnp.allclose(out, _reference(x, freqs), atol=1e-5, rtol=1e-5)

    # Extra correctness check: ragged last seq tile + multi-step batch axis
    # (exercises the edge-block masking and the per-seq-tile scratch rebuild).
    x2 = jax.random.normal(jax.random.PRNGKey(1), (3, 12, d_model), dtype=jnp.float32)
    out2 = jax.block_until_ready(
        rotary_positional_embedding(x2, freqs, seq_tile=8, batch_tile=1))
    assert jnp.allclose(out2, _reference(x2, freqs), atol=1e-5, rtol=1e-5)

    print("KERNEL_OK")
</pallas_src>

<mosaic_0001>
module attributes {stable_mosaic.version = 11 : i64} {
  func.func @_rope_kernel(%arg0: i32, %arg1: i32, %arg2: memref<8x128xf32, #tpu.memory_space<vmem>>, %arg3: memref<2x8x128xf32, #tpu.memory_space<vmem>>, %arg4: memref<2x8x128xf32, #tpu.memory_space<vmem>>, %arg5: memref<8x128xf32, #tpu.memory_space<vmem>>, %arg6: memref<8x128xf32, #tpu.memory_space<vmem>>) attributes {dimension_semantics = [#tpu.dimension_semantics<parallel>, #tpu.dimension_semantics<arbitrary>], iteration_bounds = array<i64: 1, 1>, scalar_prefetch = 0 : i64, scratch_operands = 2 : i64, tpu.core_type = #tpu.core_type<tc>, window_params = [{transform_indices = @transform_0, window_bounds = array<i64: 8, 128>}, {transform_indices = @transform_1, window_bounds = array<i64: 2, 8, 128>}, {transform_indices = @transform_2, window_bounds = array<i64: 2, 8, 128>}]} {
    %c0_i32 = arith.constant 0 : i32
    %0 = arith.cmpi eq, %arg1, %c0_i32 : i32
    %1 = arith.extui %0 : i1 to i32
    %c0_i32_0 = arith.constant 0 : i32
    %2 = arith.cmpi ne, %1, %c0_i32_0 : i32
    scf.if %2 {
      %c0_16 = arith.constant 0 : index
      %c0_17 = arith.constant 0 : index
      %23 = vector.load %arg2[%c0_16, %c0_17] : memref<8x128xf32, #tpu.memory_space<vmem>>, vector<8x128xf32>
      %c64_i32_18 = arith.constant 64 : i32
      %24 = tpu.dynamic_rotate %23 by %c64_i32_18 dim 1 : vector<8x128xf32>, i32 -> vector<8x128xf32>
      %25 = tpu.iota {dimensions = array<i32: 1>} : vector<8x128xi32>
      %c64_i32_19 = arith.constant 64 : i32
      %26 = vector.broadcast %c64_i32_19 : i32 to vector<8x128xi32>
      %27 = arith.cmpi slt, %25, %26 : vector<8x128xi32>
      %28 = arith.select %27, %23, %24 : vector<8x128xi1>, vector<8x128xf32>
      %c0_20 = arith.constant 0 : index
      %c0_21 = arith.constant 0 : index
      %29 = vector.load %arg5[%c0_20, %c0_21] : memref<8x128xf32, #tpu.memory_space<vmem>>, vector<8x128xf32>
      tpu.vector_store %arg5[%c0_20, %c0_21], %28 {strides = array<i32>} : memref<8x128xf32, #tpu.memory_space<vmem>>, vector<8x128xf32>,
      %cst = arith.constant 0.000000e+00 : f32
      %30 = vector.broadcast %cst : f32 to vector<8x128xf32>
      %31 = arith.subf %30, %24 : vector<8x128xf32>
      %32 = arith.select %27, %31, %23 : vector<8x128xi1>, vector<8x128xf32>
      %c0_22 = arith.constant 0 : index
      %c0_23 = arith.constant 0 : index
      %33 = vector.load %arg6[%c0_22, %c0_23] : memref<8x128xf32, #tpu.memory_space<vmem>>, vector<8x128xf32>
      tpu.vector_store %arg6[%c0_22, %c0_23], %32 {strides = array<i32>} : memref<8x128xf32, #tpu.memory_space<vmem>>, vector<8x128xf32>,
    } else {
    }
    %c0 = arith.constant 0 : index
    %c0_1 = arith.constant 0 : index
    %3 = vector.load %arg5[%c0, %c0_1] : memref<8x128xf32, #tpu.memory_space<vmem>>, vector<8x128xf32>
    %c0_2 = arith.constant 0 : index
    %c0_3 = arith.constant 0 : index
    %4 = vector.load %arg6[%c0_2, %c0_3] : memref<8x128xf32, #tpu.memory_space<vmem>>, vector<8x128xf32>
    %c0_4 = arith.constant 0 : index
    %c0_5 = arith.constant 0 : index
    %c0_6 = arith.constant 0 : index
    %5 = vector.load %arg3[%c0_4, %c0_5, %c0_6] : memref<2x8x128xf32, #tpu.memory_space<vmem>>, vector<1x8x128xf32>
    %6 = vector.shape_cast %5 : vector<1x8x128xf32> to vector<8x128xf32>
    %c64_i32 = arith.constant 64 : i32
    %7 = tpu.dynamic_rotate %6 by %c64_i32 dim 1 : vector<8x128xf32>, i32 -> vector<8x128xf32>
    %8 = arith.mulf %6, %3 : vector<8x128xf32>
    %9 = arith.mulf %7, %4 : vector<8x128xf32>
    %10 = arith.addf %8, %9 : vector<8x128xf32>
    %c0_7 = arith.constant 0 : index
    %c0_8 = arith.constant 0 : index
    %c0_9 = arith.constant 0 : index
    %11 = vector.load %arg4[%c0_7, %c0_8, %c0_9] : memref<2x8x128xf32, #tpu.memory_space<vmem>>, vector<1x8x128xf32>
    %12 = vector.shape_cast %11 : vector<1x8x128xf32> to vector<8x128xf32>
    %13 = vector.shape_cast %10 : vector<8x128xf32> to vector<1x8x128xf32>
    tpu.vector_store %arg4[%c0_7, %c0_8, %c0_9], %13 {strides = array<i32>} : memref<2x8x128xf32, #tpu.memory_space<vmem>>, vector<1x8x128xf32>,
    %c1 = arith.constant 1 : index
    %c0_10 = arith.constant 0 : index
    %c0_11 = arith.constant 0 : index
    %14 = vector.load %arg3[%c1, %c0_10, %c0_11] : memref<2x8x128xf32, #tpu.memory_space<vmem>>, vector<1x8x128xf32>
    %15 = vector.shape_cast %14 : vector<1x8x128xf32> to vector<8x128xf32>
    %c64_i32_12 = arith.constant 64 : i32
    %16 = tpu.dynamic_rotate %15 by %c64_i32_12 dim 1 : vector<8x128xf32>, i32 -> vector<8x128xf32>
    %17 = arith.mulf %15, %3 : vector<8x128xf32>
    %18 = arith.mulf %16, %4 : vector<8x128xf32>
    %19 = arith.addf %17, %18 : vector<8x128xf32>
    %c1_13 = arith.constant 1 : index
    %c0_14 = arith.constant 0 : index
    %c0_15 = arith.constant 0 : index
    %20 = vector.load %arg4[%c1_13, %c0_14, %c0_15] : memref<2x8x128xf32, #tpu.memory_space<vmem>>, vector<1x8x128xf32>
    %21 = vector.shape_cast %20 : vector<1x8x128xf32> to vector<8x128xf32>
    %22 = vector.shape_cast %19 : vector<8x128xf32> to vector<1x8x128xf32>
    tpu.vector_store %arg4[%c1_13, %c0_14, %c0_15], %22 {strides = array<i32>} : memref<2x8x128xf32, #tpu.memory_space<vmem>>, vector<1x8x128xf32>,
    return
  }
  func.func @transform_0(%arg0: i32, %arg1: i32) -> (i32, i32) {
    %c0_i32 = arith.constant 0 : i32
    %c0_i32_0 = arith.constant 0 : i32
    return %arg0, %c0_i32 : i32, i32
  }
  func.func @transform_1(%arg0: i32, %arg1: i32) -> (i32, i32, i32) {
    %c0_i32 = arith.constant 0 : i32
    %c0_i32_0 = arith.constant 0 : i32
    return %arg1, %arg0, %c0_i32 : i32, i32, i32
  }
  func.func @transform_2(%arg0: i32, %arg1: i32) -> (i32, i32, i32) {
    %c0_i32 = arith.constant 0 : i32
    %c0_i32_0 = arith.constant 0 : i32
    return %arg1, %arg0, %c0_i32 : i32, i32, i32
  }
}

</mosaic_0001>

<bundles_post_ra>
// kernel: tpu_custom_call.1
= control target key start
LH: loop header
LB: loop body
LE: loop exit
PB: predicated region body
PF: predicated region fallthrough
CT: control target
= control target key end

     0   :  { %7 = vsyncpa [#allocation5], 0  ;;  %s240_s0 = inlined_call_operand.hbm [shape: f32[16,128], index: 0, kind: input, shape index: {}]   ;;  %s241_s1 = inlined_call_operand.hbm [shape: f32[2,8,128], index: 1, kind: input, shape index: {}]   ;;  %s242_s2 = inlined_call_operand.hbm [shape: f32[2,8,128], index: 2, kind: output, shape index: {}]  }
   0x1   :  { %8 = vsyncpa [#allocation8], 0 }
   0x2   :  { %9 = vsyncpa [#allocation6], 0  ;;  %s167_s9 = smov [#allocation4]   ;;  %s168_s11 = smov [#allocation7]  }
   0x3   :  { %s16_s10 = sshll.u32 %s167_s9, 4  ;;  %s25_s12 = sshll.u32 %s168_s11, 4  ;;  %s17_s10 = int_to_ptr.vmem [resolvable:$true] %s16_s10  ;;  %s188_s12 = int_to_ptr.vmem [resolvable:$true] %s25_s12 }
   0x4   :  { %s95_s15 = scalar_lea.hbm %s240_s0, 128  ;;  %s97_s20 = scalar_lea.hbm %s240_s0, 256 }
   0x5   :  { %p96_p0 = scmp.ne.s32.totalorder %s240_s0, %s95_s15  ;;  %p98_p1 = scmp.lt.u32.totalorder %s97_s20, %s95_s15 }
   0x6   :  { %p99_p2 = scmp.lt.u32.totalorder %s95_s15, %s240_s0 }
   0x8   :  { %p100_p3 = por %p99_p2, %p98_p1 }
   0xa   :  { %p101_p4 = pnand %p100_p3, %p96_p0 }
   0xc   :  { %104 = shalt.err (!%p101_p4)
}
   0xd   :  { %s105_s23 = scalar_lea.vmem %s17_s10, 128  ;;  %p110_p6 = scmp.lt.s32.totalorder %s17_s10, %s17_s10 }
   0xe   :  { %p106_p5 = scmp.ne.s32.totalorder %s17_s10, %s105_s23  ;;  %p111_p7 = scmp.lt.s32.totalorder %s105_s23, %s105_s23 }
  0x10   :  { %p112_p8 = por %p111_p7, %p110_p6 }
  0x12   :  { %p113_p9 = pnand %p112_p8, %p106_p5 }
  0x14   :  { %116 = shalt.err (!%p113_p9)
}
  0x15   :  { %19 = dma.hbm_to_vmem [thread:$0]  %s240_s0, 128, %s17_s10, [#allocation5]  }
  0x16   :  { %s117_s28 = scalar_lea.hbm %s241_s1, 256 }
  0x17   :  { %p118_p10 = scmp.ne.s32.totalorder %s241_s1, %s117_s28  ;;  %p121_p11 = scmp.lt.u32.totalorder %s117_s28, %s241_s1 }
  0x19   :  { %p123_p12 = pnand %p121_p11, %p118_p10 }
  0x1b   :  { %126 = shalt.err (!%p123_p12)
}
  0x1c   :  { %s127_s5 = scalar_lea.vmem %s188_s12, 256  ;;  %p132_p0 = scmp.lt.s32.totalorder %s188_s12, %s188_s12 }
  0x1d   :  { %p128_p13 = scmp.ne.s32.totalorder %s188_s12, %s127_s5  ;;  %p133_p1 = scmp.lt.s32.totalorder %s127_s5, %s127_s5 }
  0x1f   :  { %p134_p2 = por %p133_p1, %p132_p0 }
  0x21   :  { %p135_p3 = pnand %p134_p2, %p128_p13 }
  0x23   :  { %138 = shalt.err (!%p135_p3)
}
  0x24   :  { %s169_s0 = smov 128   ;;  %s170_s6 = smov 8  }
  0x25   :  { %31 = dma.hbm_to_vmem [thread:$0]  %s241_s1, 256, %s188_s12, [#allocation8], %s169_s0, %s169_s0, %s170_s6  }
  0x26   :  { %161 = dma.done.wait [#allocation5], 128  }
  0x27   :  { %162 = vsyncadd [#allocation5], 4294967168 }
  0x28   :  { %163 = dma.done.wait [#allocation8], 256  }
  0x29   :  { %164 = vsyncadd [#allocation8], 4294967040  ;;  %v42_v0 = vld [vmem:[#allocation4] sm:$0xff]  ;;  %v63_v1 = vld [vmem:[#allocation7 + $0x8] sm:$0xff]  ;;  %s171_s9 = smov 64   ;;  %v45_v3 = vlaneseq  ;;  %s172_s1 = smov [#allocation9]  }
  0x2a   :  { %43 = vrot.lane.b32.xlu0 %v42_v0, %s171_s9  ;;  %64 = vrot.lane.b32.xlu1 %v63_v1, %s171_s9  ;;  %v55_v2 = vld [vmem:[#allocation7] sm:$0xff]  ;;  %s76_s10 = sshll.u32 %s172_s1, 4  ;;  %s77_s10 = int_to_ptr.vmem [resolvable:$true] %s76_s10 }
  0x2b   :  { %v46_v4 = vand.u32 127, %v45_v3  ;;  %s139_s11 = scalar_lea.vmem %s77_s10, 256  ;;  %p144_p5 = scmp.lt.s32.totalorder %s77_s10, %s77_s10 }
  0x2c   :  { %p140_p4 = scmp.ne.s32.totalorder %s77_s10, %s139_s11  ;;  %p145_p6 = scmp.lt.s32.totalorder %s139_s11, %s139_s11 }
  0x2d   :  { %vm47_vm0 = vcmp.lt.s32.totalorder %v46_v4, 64 }
  0x2e   :  { %56 = vrot.lane.b32.xlu0 %v55_v2, %s171_s9  ;;  %p146_p7 = por %p145_p6, %p144_p5 }
  0x30   :  { %p147_p8 = pnand %p146_p7, %p140_p4 }
  0x9c   :  { %v44_v5 = vpop.permute.xlu0 %43  ;;  %v65_v8 = vpop.permute.xlu1 %64 }
  0x9d   :  { %v48_v6 = vsel %vm47_vm0, %v42_v0, %v44_v5  ;;  %v50_v7 = vsub.f32 0.0, %v44_v5 }
  0x9e   :  { %v66_v10 = vmul.f32 %v63_v1, %v48_v6  ;;  %v58_v13 = vmul.f32 %v55_v2, %v48_v6 }
  0x9f   :  { %v51_v9 = vsel %vm47_vm0, %v50_v7, %v42_v0 }
  0xa0   :  { %v67_v11 = vmul.f32 %v65_v8, %v51_v9  ;;  %v57_v12 = vpop.permute.xlu0 %56 }
  0xa1   :  { %v59_v14 = vmul.f32 %v57_v12, %v51_v9 }
  0xa2   :  { %v68_v15 = vadd.f32 %v67_v11, %v66_v10 }
  0xa3   :  { %v60_v16 = vadd.f32 %v59_v14, %v58_v13 }
  0xa4   :  { %70 = vst [vmem:[#allocation9 + $0x8] sm:$0xff] %v68_v15 }
  0xa5   :  { %61 = vst [vmem:[#allocation9] sm:$0xff] %v60_v16 }
  0xa6   :  { %150 = shalt.err (!%p147_p8)
}
  0xa7   :  { %s151_s14 = scalar_lea.hbm %s242_s2, 256 }
  0xa8   :  { %p152_p9 = scmp.ne.s32.totalorder %s242_s2, %s151_s14  ;;  %p155_p10 = scmp.lt.u32.totalorder %s151_s14, %s242_s2 }
  0xaa   :  { %p157_p11 = pnand %p155_p10, %p152_p9 }
  0xac   :  { %160 = shalt.err (!%p157_p11)
}
  0xad   :  { %82 = dma.vmem_to_hbm [thread:$0]  %s77_s10, 256, %s242_s2, [#allocation6], %s169_s0, %s169_s0, %s170_s6  }
  0xae   :  { %165 = dma.done.wait [#allocation6], 256  }
  0xaf   :  { %166 = vsyncadd [#allocation6], 4294967040 }
  0xb0   :  { %86 = vsyncpa [#allocation5], 1 }
  0xb1   :  { %87 = vsyncpa [#allocation8], 1 }
  0xb2   :  { %88 = vsyncpa [#allocation6], 1 }

</bundles_post_ra>
